<compile_context>
chip_gen: v5e
topology: v5e:2x2
jax: 0.10.0
libtpu: 0.0.40
codegen_flags: <defaults>
</compile_context>

<pallas_src>
import math

import jax
import jax.numpy as jnp
import numpy as np
from jax.experimental import pallas as pl
from jax.experimental.pallas import tpu as pltpu

# ---------------- config (small, consistent with the module) ----------------
B = 2            # batch
T = 8            # sequence length (== block_size)
C = 32           # n_embd
N_HEAD = 4
HEAD_DIM = C // N_HEAD
EPS = 1e-5       # nn.LayerNorm default
AUX_W = 3 * C    # width of the aux slab rows (= widest bias, b_qkv)


# ------------------------------ Pallas kernel -------------------------------
def block_kernel(x_ref, w_ref, aux_ref, o_ref):
    x = x_ref[...]                       # (T, C)  one batch element
    W = w_ref[...]                       # (2C, 4C) weight slab (grid-invariant)
    aux = aux_ref[...]                   # (8 + T, 3C) LN/bias/mask slab

    # --- unpack the aux slab (static slices, no extra DMAs) ---
    ln1_g = aux[0:1, :C]
    ln1_b = aux[1:2, :C]
    b_qkv = aux[2:3, :3 * C]             # q-part already scaled by 1/sqrt(hd)
    b_ap = aux[3:4, :C]
    ln2_g = aux[4:5, :C]
    ln2_b = aux[5:6, :C]
    b_fc = aux[6:7, :2 * C]
    b_mp = aux[7:8, :C]
    mask_f = aux[8:8 + T, 0:T]           # (T, T) causal float mask (1/0)

    # --- unpack the weight slab (all stored in natural, untransposed form) ---
    w_qkv = W[0:C, 0:3 * C]              # (C, 3C), q columns pre-scaled
    w_ap = W[0:C, 3 * C:4 * C]           # (C, C)   attn c_proj
    w_fc = W[C:2 * C, 0:2 * C]           # (C, 2C)
    w_mp0 = W[C:2 * C, 2 * C:3 * C]      # (C, C)   mlp c_proj rows [0:C]
    w_mp1 = W[C:2 * C, 3 * C:4 * C]      # (C, C)   mlp c_proj rows [C:2C]

    def layernorm(v, g, b):
        mu = jnp.mean(v, axis=-1, keepdims=True)
        vc = v - mu
        var = jnp.mean(vc * vc, axis=-1, keepdims=True)
        return vc * jax.lax.rsqrt(var + EPS) * g + b

    # ---------------- attention branch ----------------
    h1 = layernorm(x, ln1_g, ln1_b)                                   # (T, C)
    qkv = jnp.maximum(
        jnp.dot(h1, w_qkv, preferred_element_type=jnp.float32) + b_qkv,
        0.0)                                                          # (T, 3C) relu(q,k,v)
    # 1/sqrt(HEAD_DIM) is already folded into the q columns/bias at pack time.

    # Per-head lane slices fed straight into tiny dots (no (H,T,D) stack -> no
    # cross-lane relayouts); the head concat is folded into c_proj.
    attn_out = b_ap                                                   # (1, C) -> bcast
    for h in range(N_HEAD):
        lo = h * HEAD_DIM
        q_h = qkv[:, lo:lo + HEAD_DIM]                                # (T, D)
        k_h = qkv[:, C + lo:C + lo + HEAD_DIM]                        # (T, D)
        v_h = qkv[:, 2 * C + lo:2 * C + lo + HEAD_DIM]                # (T, D)
        # scores: contract last dim of both (q_h @ k_h^T), MXU-native
        s_h = jax.lax.dot_general(q_h, k_h, (((1,), (1,)), ((), ())),
                                  preferred_element_type=jnp.float32)  # (T, T)
        # fused mask + relu: masked_fill(-inf) then relu == relu * {0,1} mask
        att_h = jnp.maximum(s_h, 0.0) * mask_f
        y_h = jnp.dot(att_h, v_h, preferred_element_type=jnp.float32)  # (T, D)
        # concat_h(y_h) @ W_ap == sum_h y_h @ W_ap[hD:(h+1)D, :]
        attn_out = attn_out + jnp.dot(
            y_h, w_ap[lo:lo + HEAD_DIM, :],
            preferred_element_type=jnp.float32)                        # (T, C)
    x1 = x + attn_out                                                  # first residual

    # ---------------- MLP branch ----------------
    h2 = layernorm(x1, ln2_g, ln2_b)
    fc = jnp.maximum(
        jnp.dot(h2, w_fc, preferred_element_type=jnp.float32) + b_fc,
        0.0)                                                           # (T, 2C)
    # c_proj kept untransposed (split into two (C, C) halves): plain dots, no
    # in-kernel transpose of the RHS.
    mlp_out = (jnp.dot(fc[:, :C], w_mp0, preferred_element_type=jnp.float32)
               + jnp.dot(fc[:, C:2 * C], w_mp1, preferred_element_type=jnp.float32)
               + b_mp)                                                 # (T, C)

    o_ref[...] = x1 + mlp_out                                          # second residual


# ------------------------------ host wrapper --------------------------------
def pack_params(params):
    """Pack the 12 parameter arrays into one (2C,4C) weight slab + one aux slab.

    The 1/sqrt(HEAD_DIM) attention scale is folded into the q columns of w_qkv
    and the q slice of b_qkv.  This is exact because relu is positive-
    homogeneous and the scale is positive: relu(s*q) == s*relu(q).
    """
    (ln1g, ln1b, wqkv, bqkv, wap, bap, ln2g, ln2b, wfc, bfc, wmp, bmp) = params

    scale = 1.0 / math.sqrt(HEAD_DIM)
    wqkv_s = wqkv.at[:, :C].multiply(scale)
    bqkv_s = bqkv.at[:C].multiply(scale)

    # weight slab (2C, 4C) = (64, 128), lane-dense:
    #   rows [0:C]  : [ w_qkv(scaled q) | w_attn_proj ]
    #   rows [C:2C] : [ w_fc | w_mlp_proj[0:C] | w_mlp_proj[C:2C] ]   (untransposed)
    top = jnp.concatenate([wqkv_s, wap], axis=1)                       # (C, 4C)
    bot = jnp.concatenate([wfc, wmp[:C, :], wmp[C:, :]], axis=1)       # (C, 4C)
    w_slab = jnp.concatenate([top, bot], axis=0).astype(jnp.float32)   # (2C, 4C)

    def row(v):
        return jnp.pad(v, (0, AUX_W - v.shape[0]))

    vec_rows = jnp.stack(
        [row(ln1g), row(ln1b), row(bqkv_s), row(bap),
         row(ln2g), row(ln2b), row(bfc), row(bmp)], axis=0)            # (8, 3C)

    # causal mask, built once host-side
    mask_np = np.zeros((T, AUX_W), np.float32)
    mask_np[:, :T] = np.tril(np.ones((T, T), np.float32))

    aux_slab = jnp.concatenate([vec_rows, jnp.asarray(mask_np)], axis=0)  # (8+T, 3C)
    return w_slab, aux_slab


def block_forward(x, w_slab, aux_slab):
    """x: (B, T, C) float32 -> (B, T, C) float32."""
    x2d = x.reshape(B * T, C)
    out2d = pl.pallas_call(
        block_kernel,
        out_shape=jax.ShapeDtypeStruct((B * T, C), jnp.float32),
        grid_spec=pltpu.PrefetchScalarGridSpec(
            num_scalar_prefetch=0,
            grid=(B,),                          # one grid step per batch element
            in_specs=[
                pl.BlockSpec((T, C), lambda b: (b, 0)),
                pl.BlockSpec((2 * C, 4 * C), lambda b: (0, 0)),     # grid-invariant
                pl.BlockSpec((8 + T, AUX_W), lambda b: (0, 0)),     # grid-invariant
            ],
            out_specs=pl.BlockSpec((T, C), lambda b: (b, 0)),
        ),
        compiler_params=pltpu.CompilerParams(
            dimension_semantics=("parallel",)),   # megacore-shardable on v7x
        input_output_aliases={0: 0},              # output reuses the x2d buffer
    )(x2d, w_slab, aux_slab)
    return out2d.reshape(B, T, C)


block_forward_jit = jax.jit(block_forward)


# --------------------------- plain-JAX reference ----------------------------
def block_reference(x, params):
    (ln1g, ln1b, wqkv, bqkv, wap, bap, ln2g, ln2b, wfc, bfc, wmp, bmp) = params

    def ln(v, g, b):
        mu = v.mean(-1, keepdims=True)
        var = ((v - mu) ** 2).mean(-1, keepdims=True)
        return (v - mu) / jnp.sqrt(var + EPS) * g + b

    h = ln(x, ln1g, ln1b)
    qkv = jnp.maximum(h @ wqkv + bqkv, 0.0)
    q, k, v = jnp.split(qkv, 3, axis=-1)
    q = q.reshape(B, T, N_HEAD, HEAD_DIM).transpose(0, 2, 1, 3)
    k = k.reshape(B, T, N_HEAD, HEAD_DIM).transpose(0, 2, 1, 3)
    v = v.reshape(B, T, N_HEAD, HEAD_DIM).transpose(0, 2, 1, 3)
    att = jnp.einsum("bhqd,bhkd->bhqk", q, k) / math.sqrt(HEAD_DIM)
    mask = jnp.tril(jnp.ones((T, T), bool))
    att = jnp.where(mask, att, -jnp.inf)
    att = jnp.maximum(att, 0.0)
    y = jnp.einsum("bhqk,bhkd->bhqd", att, v)
    y = y.transpose(0, 2, 1, 3).reshape(B, T, C)
    x = x + (y @ wap + bap)
    h2 = ln(x, ln2g, ln2b)
    mlp = jnp.maximum(h2 @ wfc + bfc, 0.0) @ wmp + bmp
    return x + mlp


# ---------------------------------- main -------------------------------------
if __name__ == "__main__":
    key = jax.random.PRNGKey(0)
    ks = jax.random.split(key, 16)

    def nrm(k, shape, std=0.02):
        return (std * jax.random.normal(k, shape)).astype(jnp.float32)

    # deterministic synthetic parameters (weights stored as (in, out))
    ln1_g = (1.0 + nrm(ks[9], (C,))).astype(jnp.float32)
    ln1_b = nrm(ks[10], (C,))
    w_qkv = nrm(ks[0], (C, 3 * C))
    b_qkv = nrm(ks[1], (3 * C,))
    w_ap = nrm(ks[2], (C, C))
    b_ap = nrm(ks[3], (C,))
    ln2_g = (1.0 + nrm(ks[11], (C,))).astype(jnp.float32)
    ln2_b = nrm(ks[12], (C,))
    w_fc = nrm(ks[4], (C, 2 * C))
    b_fc = nrm(ks[5], (2 * C,))
    w_mp = nrm(ks[6], (2 * C, C))
    b_mp = nrm(ks[7], (C,))

    params = [ln1_g, ln1_b, w_qkv, b_qkv, w_ap, b_ap,
              ln2_g, ln2_b, w_fc, b_fc, w_mp, b_mp]

    x = jax.random.normal(ks[8], (B, T, C), jnp.float32)

    # reference first (the kernel aliases its flattened-input buffer)
    ref = jax.block_until_ready(block_reference(x, params))

    w_slab, aux_slab = pack_params(params)
    out = block_forward_jit(x, w_slab, aux_slab)
    out = jax.block_until_ready(out)

    np.testing.assert_allclose(np.asarray(out), np.asarray(ref),
                               rtol=1e-5, atol=1e-5)
    print("KERNEL_OK")
</pallas_src>

<mosaic_0001>
module attributes {stable_mosaic.version = 11 : i64} {
  func.func @block_kernel(%arg0: i32, %arg1: memref<8x32xf32, #tpu.memory_space<vmem>>, %arg2: memref<64x128xf32, #tpu.memory_space<vmem>>, %arg3: memref<16x96xf32, #tpu.memory_space<vmem>>, %arg4: memref<8x32xf32, #tpu.memory_space<vmem>>) attributes {dimension_semantics = [#tpu.dimension_semantics<parallel>], iteration_bounds = array<i64: 2>, scalar_prefetch = 0 : i64, scratch_operands = 0 : i64, tpu.core_type = #tpu.core_type<tc>, window_params = [{transform_indices = @transform_0, window_bounds = array<i64: 8, 32>}, {pipeline_mode = #tpu.pipeline_mode<synchronous>, transform_indices = @transform_1, window_bounds = array<i64: 64, 128>}, {pipeline_mode = #tpu.pipeline_mode<synchronous>, transform_indices = @transform_2, window_bounds = array<i64: 16, 96>}, {transform_indices = @transform_3, window_bounds = array<i64: 8, 32>}]} {
    %c0 = arith.constant 0 : index
    %c0_0 = arith.constant 0 : index
    %0 = vector.load %arg1[%c0, %c0_0] : memref<8x32xf32, #tpu.memory_space<vmem>>, vector<8x32xf32>
    %c0_1 = arith.constant 0 : index
    %c0_2 = arith.constant 0 : index
    %1 = vector.load %arg2[%c0_1, %c0_2] : memref<64x128xf32, #tpu.memory_space<vmem>>, vector<64x128xf32>
    %c0_3 = arith.constant 0 : index
    %c0_4 = arith.constant 0 : index
    %2 = vector.load %arg3[%c0_3, %c0_4] : memref<16x96xf32, #tpu.memory_space<vmem>>, vector<16x96xf32>
    %3 = vector.extract_strided_slice %2 {offsets = [0, 0], sizes = [1, 32], strides = [1, 1]} : vector<16x96xf32> to vector<1x32xf32>
    %4 = vector.extract_strided_slice %2 {offsets = [1, 0], sizes = [1, 32], strides = [1, 1]} : vector<16x96xf32> to vector<1x32xf32>
    %5 = vector.extract_strided_slice %2 {offsets = [2, 0], sizes = [1, 96], strides = [1, 1]} : vector<16x96xf32> to vector<1x96xf32>
    %6 = vector.extract_strided_slice %2 {offsets = [3, 0], sizes = [1, 32], strides = [1, 1]} : vector<16x96xf32> to vector<1x32xf32>
    %7 = vector.extract_strided_slice %2 {offsets = [4, 0], sizes = [1, 32], strides = [1, 1]} : vector<16x96xf32> to vector<1x32xf32>
    %8 = vector.extract_strided_slice %2 {offsets = [5, 0], sizes = [1, 32], strides = [1, 1]} : vector<16x96xf32> to vector<1x32xf32>
    %9 = vector.extract_strided_slice %2 {offsets = [6, 0], sizes = [1, 64], strides = [1, 1]} : vector<16x96xf32> to vector<1x64xf32>
    %10 = vector.extract_strided_slice %2 {offsets = [7, 0], sizes = [1, 32], strides = [1, 1]} : vector<16x96xf32> to vector<1x32xf32>
    %11 = vector.extract_strided_slice %2 {offsets = [8, 0], sizes = [8, 8], strides = [1, 1]} : vector<16x96xf32> to vector<8x8xf32>
    %12 = vector.extract_strided_slice %1 {offsets = [0, 0], sizes = [32, 96], strides = [1, 1]} : vector<64x128xf32> to vector<32x96xf32>
    %13 = vector.extract_strided_slice %1 {offsets = [0, 96], sizes = [32, 32], strides = [1, 1]} : vector<64x128xf32> to vector<32x32xf32>
    %14 = vector.extract_strided_slice %1 {offsets = [32, 0], sizes = [32, 64], strides = [1, 1]} : vector<64x128xf32> to vector<32x64xf32>
    %15 = vector.extract_strided_slice %1 {offsets = [32, 64], sizes = [32, 32], strides = [1, 1]} : vector<64x128xf32> to vector<32x32xf32>
    %16 = vector.extract_strided_slice %1 {offsets = [32, 96], sizes = [32, 32], strides = [1, 1]} : vector<64x128xf32> to vector<32x32xf32>
    %cst = arith.constant dense<0.000000e+00> : vector<8xf32>
    %17 = vector.multi_reduction <add>, %0, %cst [1] : vector<8x32xf32> to vector<8xf32>
    %18 = vector.shape_cast %17 : vector<8xf32> to vector<8x1xf32>
    %cst_5 = arith.constant 3.200000e+01 : f32
    %19 = vector.broadcast %cst_5 : f32 to vector<8x1xf32>
    %20 = arith.divf %18, %19 : vector<8x1xf32>
    %21 = vector.broadcast %20 : vector<8x1xf32> to vector<8x32xf32>
    %22 = arith.subf %0, %21 : vector<8x32xf32>
    %23 = arith.mulf %22, %22 : vector<8x32xf32>
    %cst_6 = arith.constant dense<0.000000e+00> : vector<8xf32>
    %24 = vector.multi_reduction <add>, %23, %cst_6 [1] : vector<8x32xf32> to vector<8xf32>
    %25 = vector.shape_cast %24 : vector<8xf32> to vector<8x1xf32>
    %cst_7 = arith.constant 3.200000e+01 : f32
    %26 = vector.broadcast %cst_7 : f32 to vector<8x1xf32>
    %27 = arith.divf %25, %26 : vector<8x1xf32>
    %cst_8 = arith.constant 9.99999974E-6 : f32
    %28 = vector.broadcast %cst_8 : f32 to vector<8x1xf32>
    %29 = arith.addf %27, %28 : vector<8x1xf32>
    %30 = math.rsqrt %29 : vector<8x1xf32>
    %31 = vector.broadcast %30 : vector<8x1xf32> to vector<8x32xf32>
    %32 = arith.mulf %22, %31 : vector<8x32xf32>
    %33 = vector.broadcast %3 : vector<1x32xf32> to vector<8x32xf32>
    %34 = arith.mulf %32, %33 : vector<8x32xf32>
    %35 = vector.broadcast %4 : vector<1x32xf32> to vector<8x32xf32>
    %36 = arith.addf %34, %35 : vector<8x32xf32>
    %cst_9 = arith.constant dense<0.000000e+00> : vector<8x96xf32>
    %37 = tpu.matmul %36, %12, %cst_9 {dimension_numbers = #tpu.dot_dimension_numbers<[1], [0], [0], [1], [0, 0, 1, 1], [], []>} : vector<8x32xf32>, vector<32x96xf32>, vector<8x96xf32> -> vector<8x96xf32>
    %38 = vector.broadcast %5 : vector<1x96xf32> to vector<8x96xf32>
    %39 = arith.addf %37, %38 : vector<8x96xf32>
    %cst_10 = arith.constant 0.000000e+00 : f32
    %40 = vector.broadcast %cst_10 : f32 to vector<8x96xf32>
    %41 = arith.maximumf %39, %40 : vector<8x96xf32>
    %42 = vector.extract_strided_slice %41 {offsets = [0, 0], sizes = [8, 8], strides = [1, 1]} : vector<8x96xf32> to vector<8x8xf32>
    %43 = vector.extract_strided_slice %41 {offsets = [0, 32], sizes = [8, 8], strides = [1, 1]} : vector<8x96xf32> to vector<8x8xf32>
    %44 = vector.extract_strided_slice %41 {offsets = [0, 64], sizes = [8, 8], strides = [1, 1]} : vector<8x96xf32> to vector<8x8xf32>
    %cst_11 = arith.constant dense<0.000000e+00> : vector<8x8xf32>
    %45 = tpu.matmul %42, %43, %cst_11 {dimension_numbers = #tpu.dot_dimension_numbers<[1], [1], [0], [0], [0, 0, 1, 0], [], []>} : vector<8x8xf32>, vector<8x8xf32>, vector<8x8xf32> -> vector<8x8xf32>
    %cst_12 = arith.constant 0.000000e+00 : f32
    %46 = vector.broadcast %cst_12 : f32 to vector<8x8xf32>
    %47 = arith.maximumf %45, %46 : vector<8x8xf32>
    %48 = arith.mulf %47, %11 : vector<8x8xf32>
    %cst_13 = arith.constant dense<0.000000e+00> : vector<8x8xf32>
    %49 = tpu.matmul %48, %44, %cst_13 {dimension_numbers = #tpu.dot_dimension_numbers<[1], [0], [0], [1], [0, 0, 1, 1], [], []>} : vector<8x8xf32>, vector<8x8xf32>, vector<8x8xf32> -> vector<8x8xf32>
    %50 = vector.extract_strided_slice %13 {offsets = [0, 0], sizes = [8, 32], strides = [1, 1]} : vector<32x32xf32> to vector<8x32xf32>
    %cst_14 = arith.constant dense<0.000000e+00> : vector<8x32xf32>
    %51 = tpu.matmul %49, %50, %cst_14 {dimension_numbers = #tpu.dot_dimension_numbers<[1], [0], [0], [1], [0, 0, 1, 1], [], []>} : vector<8x8xf32>, vector<8x32xf32>, vector<8x32xf32> -> vector<8x32xf32>
    %52 = vector.broadcast %6 : vector<1x32xf32> to vector<8x32xf32>
    %53 = arith.addf %52, %51 : vector<8x32xf32>
    %54 = vector.extract_strided_slice %41 {offsets = [0, 8], sizes = [8, 8], strides = [1, 1]} : vector<8x96xf32> to vector<8x8xf32>
    %55 = vector.extract_strided_slice %41 {offsets = [0, 40], sizes = [8, 8], strides = [1, 1]} : vector<8x96xf32> to vector<8x8xf32>
    %56 = vector.extract_strided_slice %41 {offsets = [0, 72], sizes = [8, 8], strides = [1, 1]} : vector<8x96xf32> to vector<8x8xf32>
    %cst_15 = arith.constant dense<0.000000e+00> : vector<8x8xf32>
    %57 = tpu.matmul %54, %55, %cst_15 {dimension_numbers = #tpu.dot_dimension_numbers<[1], [1], [0], [0], [0, 0, 1, 0], [], []>} : vector<8x8xf32>, vector<8x8xf32>, vector<8x8xf32> -> vector<8x8xf32>
    %cst_16 = arith.constant 0.000000e+00 : f32
    %58 = vector.broadcast %cst_16 : f32 to vector<8x8xf32>
    %59 = arith.maximumf %57, %58 : vector<8x8xf32>
    %60 = arith.mulf %59, %11 : vector<8x8xf32>
    %cst_17 = arith.constant dense<0.000000e+00> : vector<8x8xf32>
    %61 = tpu.matmul %60, %56, %cst_17 {dimension_numbers = #tpu.dot_dimension_numbers<[1], [0], [0], [1], [0, 0, 1, 1], [], []>} : vector<8x8xf32>, vector<8x8xf32>, vector<8x8xf32> -> vector<8x8xf32>
    %62 = vector.extract_strided_slice %13 {offsets = [8, 0], sizes = [8, 32], strides = [1, 1]} : vector<32x32xf32> to vector<8x32xf32>
    %cst_18 = arith.constant dense<0.000000e+00> : vector<8x32xf32>
    %63 = tpu.matmul %61, %62, %cst_18 {dimension_numbers = #tpu.dot_dimension_numbers<[1], [0], [0], [1], [0, 0, 1, 1], [], []>} : vector<8x8xf32>, vector<8x32xf32>, vector<8x32xf32> -> vector<8x32xf32>
    %64 = arith.addf %53, %63 : vector<8x32xf32>
    %65 = vector.extract_strided_slice %41 {offsets = [0, 16], sizes = [8, 8], strides = [1, 1]} : vector<8x96xf32> to vector<8x8xf32>
    %66 = vector.extract_strided_slice %41 {offsets = [0, 48], sizes = [8, 8], strides = [1, 1]} : vector<8x96xf32> to vector<8x8xf32>
    %67 = vector.extract_strided_slice %41 {offsets = [0, 80], sizes = [8, 8], strides = [1, 1]} : vector<8x96xf32> to vector<8x8xf32>
    %cst_19 = arith.constant dense<0.000000e+00> : vector<8x8xf32>
    %68 = tpu.matmul %65, %66, %cst_19 {dimension_numbers = #tpu.dot_dimension_numbers<[1], [1], [0], [0], [0, 0, 1, 0], [], []>} : vector<8x8xf32>, vector<8x8xf32>, vector<8x8xf32> -> vector<8x8xf32>
    %cst_20 = arith.constant 0.000000e+00 : f32
    %69 = vector.broadcast %cst_20 : f32 to vector<8x8xf32>
    %70 = arith.maximumf %68, %69 : vector<8x8xf32>
    %71 = arith.mulf %70, %11 : vector<8x8xf32>
    %cst_21 = arith.constant dense<0.000000e+00> : vector<8x8xf32>
    %72 = tpu.matmul %71, %67, %cst_21 {dimension_numbers = #tpu.dot_dimension_numbers<[1], [0], [0], [1], [0, 0, 1, 1], [], []>} : vector<8x8xf32>, vector<8x8xf32>, vector<8x8xf32> -> vector<8x8xf32>
    %73 = vector.extract_strided_slice %13 {offsets = [16, 0], sizes = [8, 32], strides = [1, 1]} : vector<32x32xf32> to vector<8x32xf32>
    %cst_22 = arith.constant dense<0.000000e+00> : vector<8x32xf32>
    %74 = tpu.matmul %72, %73, %cst_22 {dimension_numbers = #tpu.dot_dimension_numbers<[1], [0], [0], [1], [0, 0, 1, 1], [], []>} : vector<8x8xf32>, vector<8x32xf32>, vector<8x32xf32> -> vector<8x32xf32>
    %75 = arith.addf %64, %74 : vector<8x32xf32>
    %76 = vector.extract_strided_slice %41 {offsets = [0, 24], sizes = [8, 8], strides = [1, 1]} : vector<8x96xf32> to vector<8x8xf32>
    %77 = vector.extract_strided_slice %41 {offsets = [0, 56], sizes = [8, 8], strides = [1, 1]} : vector<8x96xf32> to vector<8x8xf32>
    %78 = vector.extract_strided_slice %41 {offsets = [0, 88], sizes = [8, 8], strides = [1, 1]} : vector<8x96xf32> to vector<8x8xf32>
    %cst_23 = arith.constant dense<0.000000e+00> : vector<8x8xf32>
    %79 = tpu.matmul %76, %77, %cst_23 {dimension_numbers = #tpu.dot_dimension_numbers<[1], [1], [0], [0], [0, 0, 1, 0], [], []>} : vector<8x8xf32>, vector<8x8xf32>, vector<8x8xf32> -> vector<8x8xf32>
    %cst_24 = arith.constant 0.000000e+00 : f32
    %80 = vector.broadcast %cst_24 : f32 to vector<8x8xf32>
    %81 = arith.maximumf %79, %80 : vector<8x8xf32>
    %82 = arith.mulf %81, %11 : vector<8x8xf32>
    %cst_25 = arith.constant dense<0.000000e+00> : vector<8x8xf32>
    %83 = tpu.matmul %82, %78, %cst_25 {dimension_numbers = #tpu.dot_dimension_numbers<[1], [0], [0], [1], [0, 0, 1, 1], [], []>} : vector<8x8xf32>, vector<8x8xf32>, vector<8x8xf32> -> vector<8x8xf32>
    %84 = vector.extract_strided_slice %13 {offsets = [24, 0], sizes = [8, 32], strides = [1, 1]} : vector<32x32xf32> to vector<8x32xf32>
    %cst_26 = arith.constant dense<0.000000e+00> : vector<8x32xf32>
    %85 = tpu.matmul %83, %84, %cst_26 {dimension_numbers = #tpu.dot_dimension_numbers<[1], [0], [0], [1], [0, 0, 1, 1], [], []>} : vector<8x8xf32>, vector<8x32xf32>, vector<8x32xf32> -> vector<8x32xf32>
    %86 = arith.addf %75, %85 : vector<8x32xf32>
    %87 = arith.addf %0, %86 : vector<8x32xf32>
    %cst_27 = arith.constant dense<0.000000e+00> : vector<8xf32>
    %88 = vector.multi_reduction <add>, %87, %cst_27 [1] : vector<8x32xf32> to vector<8xf32>
    %89 = vector.shape_cast %88 : vector<8xf32> to vector<8x1xf32>
    %cst_28 = arith.constant 3.200000e+01 : f32
    %90 = vector.broadcast %cst_28 : f32 to vector<8x1xf32>
    %91 = arith.divf %89, %90 : vector<8x1xf32>
    %92 = vector.broadcast %91 : vector<8x1xf32> to vector<8x32xf32>
    %93 = arith.subf %87, %92 : vector<8x32xf32>
    %94 = arith.mulf %93, %93 : vector<8x32xf32>
    %cst_29 = arith.constant dense<0.000000e+00> : vector<8xf32>
    %95 = vector.multi_reduction <add>, %94, %cst_29 [1] : vector<8x32xf32> to vector<8xf32>
    %96 = vector.shape_cast %95 : vector<8xf32> to vector<8x1xf32>
    %cst_30 = arith.constant 3.200000e+01 : f32
    %97 = vector.broadcast %cst_30 : f32 to vector<8x1xf32>
    %98 = arith.divf %96, %97 : vector<8x1xf32>
    %cst_31 = arith.constant 9.99999974E-6 : f32
    %99 = vector.broadcast %cst_31 : f32 to vector<8x1xf32>
    %100 = arith.addf %98, %99 : vector<8x1xf32>
    %101 = math.rsqrt %100 : vector<8x1xf32>
    %102 = vector.broadcast %101 : vector<8x1xf32> to vector<8x32xf32>
    %103 = arith.mulf %93, %102 : vector<8x32xf32>
    %104 = vector.broadcast %7 : vector<1x32xf32> to vector<8x32xf32>
    %105 = arith.mulf %103, %104 : vector<8x32xf32>
    %106 = vector.broadcast %8 : vector<1x32xf32> to vector<8x32xf32>
    %107 = arith.addf %105, %106 : vector<8x32xf32>
    %cst_32 = arith.constant dense<0.000000e+00> : vector<8x64xf32>
    %108 = tpu.matmul %107, %14, %cst_32 {dimension_numbers = #tpu.dot_dimension_numbers<[1], [0], [0], [1], [0, 0, 1, 1], [], []>} : vector<8x32xf32>, vector<32x64xf32>, vector<8x64xf32> -> vector<8x64xf32>
    %109 = vector.broadcast %9 : vector<1x64xf32> to vector<8x64xf32>
    %110 = arith.addf %108, %109 : vector<8x64xf32>
    %cst_33 = arith.constant 0.000000e+00 : f32
    %111 = vector.broadcast %cst_33 : f32 to vector<8x64xf32>
    %112 = arith.maximumf %110, %111 : vector<8x64xf32>
    %113 = vector.extract_strided_slice %112 {offsets = [0, 0], sizes = [8, 32], strides = [1, 1]} : vector<8x64xf32> to vector<8x32xf32>
    %cst_34 = arith.constant dense<0.000000e+00> : vector<8x32xf32>
    %114 = tpu.matmul %113, %15, %cst_34 {dimension_numbers = #tpu.dot_dimension_numbers<[1], [0], [0], [1], [0, 0, 1, 1], [], []>} : vector<8x32xf32>, vector<32x32xf32>, vector<8x32xf32> -> vector<8x32xf32>
    %115 = vector.extract_strided_slice %112 {offsets = [0, 32], sizes = [8, 32], strides = [1, 1]} : vector<8x64xf32> to vector<8x32xf32>
    %cst_35 = arith.constant dense<0.000000e+00> : vector<8x32xf32>
    %116 = tpu.matmul %115, %16, %cst_35 {dimension_numbers = #tpu.dot_dimension_numbers<[1], [0], [0], [1], [0, 0, 1, 1], [], []>} : vector<8x32xf32>, vector<32x32xf32>, vector<8x32xf32> -> vector<8x32xf32>
    %117 = arith.addf %114, %116 : vector<8x32xf32>
    %118 = vector.broadcast %10 : vector<1x32xf32> to vector<8x32xf32>
    %119 = arith.addf %117, %118 : vector<8x32xf32>
    %120 = arith.addf %87, %119 : vector<8x32xf32>
    %c0_36 = arith.constant 0 : index
    %c0_37 = arith.constant 0 : index
    %121 = vector.load %arg4[%c0_36, %c0_37] : memref<8x32xf32, #tpu.memory_space<vmem>>, vector<8x32xf32>
    tpu.vector_store %arg4[%c0_36, %c0_37], %120 {strides = array<i32>} : memref<8x32xf32, #tpu.memory_space<vmem>>, vector<8x32xf32>,
    return
  }
  func.func @transform_0(%arg0: i32) -> (i32, i32) {
    %c0_i32 = arith.constant 0 : i32
    %c0_i32_0 = arith.constant 0 : i32
    return %arg0, %c0_i32 : i32, i32
  }
  func.func @transform_1(%arg0: i32) -> (i32, i32) {
    %c0_i32 = arith.constant 0 : i32
    %c0_i32_0 = arith.constant 0 : i32
    %c0_i32_1 = arith.constant 0 : i32
    return %c0_i32, %c0_i32_0 : i32, i32
  }
  func.func @transform_2(%arg0: i32) -> (i32, i32) {
    %c0_i32 = arith.constant 0 : i32
    %c0_i32_0 = arith.constant 0 : i32
    %c0_i32_1 = arith.constant 0 : i32
    return %c0_i32, %c0_i32_0 : i32, i32
  }
  func.func @transform_3(%arg0: i32) -> (i32, i32) {
    %c0_i32 = arith.constant 0 : i32
    %c0_i32_0 = arith.constant 0 : i32
    return %arg0, %c0_i32 : i32, i32
  }
}

</mosaic_0001>

<bundles_post_ra>
// kernel: block_forward.1
= control target key start
LH: loop header
LB: loop body
LE: loop exit
PB: predicated region body
PF: predicated region fallthrough
CT: control target
= control target key end

     0   :  { %8 = vsyncpa [#allocation3], 0  ;;  %s960_s12 = smov 0   ;;  %s1054_s0 = inlined_call_operand.vmem [shape: f32[16,32], index: 0, kind: input, shape index: {}, may-alias: {0,3}]   ;;  %s1055_s1 = inlined_call_operand.hbm [shape: f32[64,128], index: 1, kind: input, shape index: {}]   ;;  %s1056_s2 = inlined_call_operand.vmem [shape: f32[16,96], index: 2, kind: input, shape index: {}]   ;;  %s1057_s3 = inlined_call_operand.vmem [shape: f32[16,32], index: 3, kind: output, shape index: {}, may-alias: {0,3}]  }
   0x1 LB: > { %s124_s15 = sshll.u32 %s1055_s1, 4  ;;  %s786_s16 = sadd.s32 4294967295, %s922_s12   ;;  %s922_s12 = sphi %s960_s12, %s14_s12   ;;  %s125_s15 = int_to_ptr.hbm [resolvable:$true] %s124_s15 }
   0x2   : > { %p788_p0 = scmp.ge.s32.totalorder %s922_s12, 1  ;;  %p113_p1 = scmp.lt.s32.totalorder %s922_s12, 3 }
   0x3   : > { %p825_p2 = scmp.eq.s32.totalorder %s786_s16, 0  ;;  %s924_s17 = smov [#allocation2]  }
   0x4   : > { %p114_p3 = pnand %p788_p0, %p113_p1  ;;  %s126_s18 = sshll.u32 %s924_s17, 4  ;;  %s127_s18 = int_to_ptr.vmem [resolvable:$true] %s126_s18 }
   0x5   : > { %s925_s19 = smov 128   ;;  %s926_s20 = smov 8  }
   0x6   : > { %p821_p4 = pneg %p114_p3  ;;  %152 = sbr.rel (%p114_p3) target bundleno = 1969 (0x7b1), region = 32 }
   0x8   : > { %p822_p5 = pnand %p825_p2, %p821_p4 }
   0xa   : > { %824 = dma.hbm_to_vmem [thread:$0]  (!%p822_p5), %s125_s15, 1024, %s127_s18, [#allocation3], %s925_s19, %s925_s19, %s926_s20  }
   0xb   : > { %917 = dma.done.wait (%p825_p2), [#allocation3], 1024  }
   0xc   : > { %919 = vsyncadd (%p825_p2), [#allocation3], 4294966272  ;;  %p175_p6 = scmp.lt.s32.totalorder %s786_s16, 1  ;;  %vm194_vm0 = vcmask 261120   ;;  %v927_v2 = vmov 32.0   ;;  %v187_v14 = vld [vmem:[#allocation2 + $0x18] sm:$0xff] }
   0xd   : > { %876 = vrcp.f32 %v927_v2  ;;  %244 = vmatpush.msra.mxu0 %v187_v14  ;;  %v186_v15 = vld [vmem:[#allocation2 + $0x10] sm:$0xff]  ;;  %v184_v16 = vld [vmem:[#allocation2] sm:$0xff]  ;;  %v185_v18 = vld [vmem:[#allocation2 + $0x8] sm:$0xff]  ;;  %s928_s25 = smov 32   ;;  %s929_s28 = smov 48   ;;  %vm256_vm5 = vcmask 64512  }
   0xe   : > { %s1059_s16 = smov (!%p175_p6, %s786_s16), 1  ;;  %v851_v17 = vpack.i.bf16 %v187_v14, %v186_v15  ;;  %v993_v27 = vld [vmem:[%s1056_s2] sm:$0xff]  ;;  %s930_s29 = smov 88   ;;  %v193_v52 = vld [vmem:[%s1056_s2 + $0x8] sm:$0xff] }
   0xf   : > { %s793_s21 = sshll.u32 %s1059_s16, 3  ;;  %245 = vmatpush.msra.mxu0 %v186_v15  ;;  %v224_v29 = vperm.slane %v993_v27, 0  ;;  %v226_v32 = vperm.slane %v993_v27, 1  ;;  %v228_v35 = vperm.slane %v993_v27, 2  ;;  %s931_s30 = smov 96  }
  0x10   : > { %s178_s24 = scalar_lea.vmem %s1054_s0, %s793_s21  ;;  %s932_s4 = smov 120  }
  0x11   : > { %v979_v0 = vld [vmem:[%s178_s24] sm:$0xff]  ;;  %246 = vmatpush.msra.mxu0 %v185_v18  ;;  %s933_s5 = smov 64   ;;  %s934_s6 = smov 80  }
  0x12   : > { %v195_v1 = vsel %vm194_vm0, %v979_v0, 0.0  ;;  %s935_s7 = smov 56   ;;  %s936_s8 = smov 112  }
  0x13   : > { %196 = vadd.xlane.f32.xlu0 %v195_v1  ;;  %v877_v3 = vpop.eup %876  ;;  %247 = vmatpush.msra.mxu0 %v184_v16  ;;  %s937_s9 = smov 104   ;;  %s938_s10 = smov 72  }
  0x14   : > { %v199_v4 = vmul.f32 32.0, %v877_v3  ;;  %vm203_vm1 = vweird.f32 %v877_v3  ;;  %s939_s11 = smov 40   ;;  %s182_s18 = scalar_lea.vmem %s1057_s3, %s793_s21 }
  0x16   : > { %v200_v5 = vsub.f32 1.0, %v199_v4 }
  0x18   : > { %v201_v6 = vmul.f32 %v877_v3, %v200_v5 }
  0x1a   : > { %v202_v7 = vadd.f32 %v877_v3, %v201_v6  ;;  %v336_v6 = vperm.slane %v993_v27, 3 }
  0x1c   : > { %v983_v8 = vsel %vm203_vm1, %v877_v3, %v202_v7 }
  0x86   : > { %v197_v9 = vpop.xlane.xlu0 %196 }
  0x87   : > { %v205_v10 = vmul.f32 %v983_v8, %v197_v9 }
  0x89   : > { %v206_v11 = vsub.f32 %v979_v0, %v205_v10 }
  0x8b   : > { %v207_v12 = vmul.f32 %v206_v11, %v206_v11 }
  0x8d   : > { %v208_v13 = vsel %vm194_vm0, %v207_v12, 0.0 }
  0x8e   : > { %209 = vadd.xlane.f32.xlu0 %v208_v13 }
  0xa2   : > { %310 = vrot.lane.b32.xlu0 %v184_v16, %s928_s25 }
 0x101   : > { %v210_v19 = vpop.xlane.xlu0 %209 }
 0x102   : > { %v211_v20 = vmul.f32 %v210_v19, %v983_v8 }
 0x104   : > { %v212_v21 = vadd.f32 1e-05, %v211_v20 }
 0x106   : > { %878 = vrsqrt.f32 %v212_v21  ;;  %vm219_vm3 = vweird.f32 %v212_v21 }
 0x10c   : > { %v879_v22 = vpop.eup %878 }
 0x10d   : > { %v214_v23 = vmul.f32 %v879_v22, %v212_v21  ;;  %vm220_vm2 = vweird.f32 %v879_v22 }
 0x10e   : > { %vm221_vm4 = vmor %vm219_vm3, %vm220_vm2 }
 0x10f   : > { %v215_v24 = vmul.f32 %v879_v22, %v214_v23 }
 0x111   : > { %v216_v25 = vmul.f32 0.5, %v215_v24 }
 0x113   : > { %v217_v26 = vsub.f32 1.5, %v216_v25 }
 0x114   : > { %v311_v39 = vpop.permute.xlu0 %310 }
 0x115   : > { %v218_v28 = vmul.f32 %v879_v22, %v217_v26  ;;  %331 = vmatpush.msra.mxu3 %v311_v39  ;;  %v191_v26 = vld [vmem:[#allocation2 + $0x38] sm:$0xff] }
 0x117   : > { %v222_v30 = vsel %vm221_vm4, %v879_v22, %v218_v28  ;;  %v190_v28 = vld [vmem:[#allocation2 + $0x30] sm:$0xff] }
 0x118   : > { %v223_v31 = vmul.f32 %v222_v30, %v206_v11  ;;  %v856_v30 = vpack.i.bf16 %v190_v28, %v191_v26 }
 0x11a   : > { %v225_v33 = vmul.f32 %v224_v29, %v223_v31  ;;  %v189_v29 = vld [vmem:[#allocation2 + $0x28] sm:$0xff] }
 0x11c   : > { %v227_v34 = vadd.f32 %v226_v32, %v225_v33 }
 0x11e   : > { %795 = vmatmul.msk.f32.vlgmr.msra.gmra.mxu0 %vm194_vm0, %v227_v34 }
 0x19b   : > { %v249_v36 = vpop.f32.mrf.mxu0 }
 0x19c   : > { %v250_v37 = vadd.f32 %v249_v36, %v228_v35 }
 0x19e   : > { %v252_v38 = vmax.f32 %v250_v37, 0.0 }
 0x1a0   : > { %452 = vrot.lane.b32.xlu0 %v252_v38, %s929_s28  ;;  %340 = vrot.lane.b32.xlu2 %v252_v38, %s930_s29 }
 0x1a1   : > { %254 = vrot.lane.b32.xlu1 %v252_v38, %s931_s30 }
 0x1a8   : > { %338 = vrot.lane.b32.xlu2 %v252_v38, %s932_s4 }
 0x1a9   : > { %283 = vrot.lane.b32.xlu1 %v252_v38, %s933_s5 }
 0x1b0   : > { %424 = vrot.lane.b32.xlu2 %v252_v38, %s934_s6 }
 0x1b1   : > { %368 = vrot.lane.b32.xlu1 %v252_v38, %s935_s7 }
 0x1b8   : > { %422 = vrot.lane.b32.xlu2 %v252_v38, %s936_s8 }
 0x1b9   : > { %395 = vrot.lane.b32.xlu1 %v185_v18, %s928_s25 }
 0x1c0   : > { %506 = vrot.lane.b32.xlu2 %v252_v38, %s937_s9 }
 0x1c1   : > { %508 = vrot.lane.b32.xlu1 %v252_v38, %s938_s10 }
 0x1c8   : > { %852 = vrot.lane.b32.xlu2 %v851_v17, %s928_s25 }
 0x1c9   : > { %536 = vrot.lane.b32.xlu1 %v252_v38, %s939_s11 }
 0x1d0   : > { %857 = vrot.lane.b32.xlu2 %v856_v30, %s928_s25 }
 0x1d8   : > { %862 = vrot.lane.b32.xlu2 %v856_v30, %s933_s5 }
 0x1fa   : > { %v341_v40 = vpop.permute.xlu2 %340 }
 0x202   : > { %v339_v41 = vpop.permute.xlu2 %338 }
 0x20a   : > { %v425_v42 = vpop.permute.xlu2 %424 }
 0x20b   : > { %804 = vmatpush.xpose.msk.msrb.mxu0 %vm256_vm5, %v425_v42 }
 0x212   : > { %v423_v43 = vpop.permute.xlu2 %422  ;;  %v453_v54 = vpop.permute.xlu0 %452 }
 0x213   : > { %v255_v44 = vpop.permute.xlu1 %254  ;;  %805 = vmatmul.msk.f32.vlgmr.msrb.gmra.mxu0 %vm256_vm5, %v423_v43  ;;  %v615_v43 = vperm.slane %v993_v27, 5 }
 0x214   : > { %796 = vmatpush.xpose.msk.msra.mxu1 %vm256_vm5, %v255_v44 }
 0x217   : > { %797 = vmatmul.msk.f32.vlgmr.msra.gmra.mxu1 %vm256_vm5, %v252_v38 }
 0x21a   : > { %v507_v58 = vpop.permute.xlu2 %506 }
 0x21b   : > { %v284_v45 = vpop.permute.xlu1 %283 }
 0x21c   : > { %304 = vmatpush.msra.mxu2 %v284_v45 }
 0x21e   : > { %800 = vmatpush.xpose.msk.msrb.mxu2 %vm256_vm5, %v341_v40 }
 0x222   : > { %v853_v59 = vpop.permute.xlu2 %852 }
 0x223   : > { %v369_v46 = vpop.permute.xlu1 %368  ;;  %v855_v60 = vunpack.i.h.bf16 %v853_v59  ;;  %v854_v61 = vunpack.i.l.bf16 %v853_v59 }
 0x224   : > { %389 = vmatpush.msrb.mxu3 %v369_v46 }
 0x22a   : > { %v858_v46 = vpop.permute.xlu2 %857 }
 0x22b   : > { %v396_v47 = vpop.permute.xlu1 %395 }
 0x22c   : > { %416 = vmatpush.msrb.mxu1 %v396_v47  ;;  %v860_v47 = vunpack.i.h.bf16 %v858_v46 }
 0x233   : > { %v509_v48 = vpop.permute.xlu1 %508 }
 0x234   : > { %808 = vmatpush.xpose.msk.msra.mxu1 %vm256_vm5, %v509_v48  ;;  %v859_v48 = vunpack.i.l.bf16 %v858_v46 }
 0x23b   : > { %v537_v49 = vpop.permute.xlu1 %536 }
 0x23c   : > { %557 = vmatpush.msra.mxu0 %v537_v49  ;;  %v863_v49 = vpop.permute.xlu2 %862 }
 0x290   : > { %v447_v55 = vpop.f32.mrf.mxu0 }
 0x291   : > { %v450_v56 = vmax.f32 %v447_v55, 0.0 }
 0x293   : > { %v451_v57 = vmul.f32 %v450_v56, %v193_v52 }
 0x294   : > { %v278_v50 = vpop.f32.mrf.mxu1 }
 0x295   : > { %v281_v51 = vmax.f32 %v278_v50, 0.0  ;;  %v865_v50 = vunpack.i.h.bf16 %v863_v49 }
 0x297   : > { %v282_v53 = vmul.f32 %v281_v51, %v193_v52  ;;  %v864_v51 = vunpack.i.l.bf16 %v863_v49 }
 0x299   : > { %798 = vmatmul.msk.f32.vlgmr.msra.gmra.mxu2 %vm256_vm5, %v282_v53  ;;  %709 = vmatpush.msrb.mxu0 %v864_v51 }
 0x29a   : > { %473 = vmatpush.msra.mxu2 %v453_v54 }
 0x29b   : > { %710 = vmatpush.msrb.mxu0 %v865_v50 }
 0x2a1   : > { %801 = vmatmul.msk.f32.vlgmr.msrb.gmra.mxu2 %vm256_vm5, %v339_v41  ;;  %v613_v41 = vperm.slane %v993_v27, 4 }
 0x2a2   : > { %584 = vmatpush.msrb.mxu2 %v855_v60 }
 0x2a9   : > { %806 = vmatmul.msk.f32.vlgmr.msra.gmra.mxu2 %vm256_vm5, %v451_v57 }
 0x31c   : > { %v306_v62 = vpop.f32.mrf.mxu2 }
 0x31d   : > { %799 = vmatmul.msk.f32.vlgmr.msra.gmra.mxu3 %vm256_vm5, %v306_v62 }
 0x31e   : > { %500 = vmatpush.msra.mxu3 %v854_v61 }
 0x324   : > { %v363_v63 = vpop.f32.mrf.mxu2 }
 0x325   : > { %v366_v1 = vmax.f32 %v363_v63, 0.0  ;;  %v717_v63 = vperm.slane %v993_v27, 7 }
 0x327   : > { %v367_v2 = vmul.f32 %v366_v1, %v193_v52 }
 0x329   : > { %802 = vmatmul.msk.f32.vlgmr.msrb.gmra.mxu3 %vm256_vm5, %v367_v2 }
 0x32a   : > { %633 = vmatpush.msrb.mxu3 %v191_v26 }
 0x32c   : > { %v475_v3 = vpop.f32.mrf.mxu2  ;;  %634 = vmatpush.msrb.mxu3 %v190_v28 }
 0x32e   : > { %635 = vmatpush.msrb.mxu3 %v189_v29 }
 0x331   : > { %807 = vmatmul.msk.f32.vlgmr.msra.gmra.mxu3 %vm256_vm5, %v475_v3 }
 0x3a0   : > { %v333_v4 = vpop.f32.mrf.mxu3 }
 0x3a1   : > { %v337_v7 = vadd.f32 %v336_v6, %v333_v4 }
 0x3ac   : > { %v391_v5 = vpop.f32.mrf.mxu3 }
 0x3ad   : > { %803 = vmatmul.msk.f32.vlgmr.msrb.gmra.mxu1 %vm256_vm5, %v391_v5 }
 0x3ae   : > { %675 = vmatpush.msrb.mxu1 %v859_v48 }
 0x3b0   : > { %676 = vmatpush.msrb.mxu1 %v860_v47 }
 0x3b4   : > { %v502_v15 = vpop.f32.mrf.mxu3 }
 0x3b5   : > { %809 = vmatmul.msk.f32.vlgmr.msra.gmra.mxu1 %vm256_vm5, %v507_v58  ;;  %v617_v58 = vperm.slane %v993_v27, 6 }
 0x42a   : > { %v418_v9 = vpop.f32.mrf.mxu1 }
 0x42b   : > { %v421_v10 = vadd.f32 %v418_v9, %v337_v7 }
 0x42d   : > { %v505_v16 = vadd.f32 %v502_v15, %v421_v10 }
 0x432   : > { %v531_v11 = vpop.f32.mrf.mxu1 }
 0x433   : > { %v534_v12 = vmax.f32 %v531_v11, 0.0 }
 0x435   : > { %v535_v13 = vmul.f32 %v534_v12, %v193_v52 }
 0x437   : > { %810 = vmatmul.msk.f32.vlgmr.msra.gmra.mxu0 %vm256_vm5, %v535_v13 }
 0x4b4   : > { %v559_v14 = vpop.f32.mrf.mxu0 }
 0x4b5   : > { %811 = vmatmul.msk.f32.vlgmr.msrb.gmra.mxu2 %vm256_vm5, %v559_v14 }
 0x538   : > { %v586_v17 = vpop.f32.mrf.mxu2 }
 0x539   : > { %v589_v18 = vadd.f32 %v586_v17, %v505_v16 }
 0x53b   : > { %v1024_v19 = vadd.f32 %v589_v18, %v979_v0  ;;  %v188_v0 = vld [vmem:[#allocation2 + $0x20] sm:$0xff] }
 0x53c   : > { %636 = vmatpush.msrb.mxu3 %v188_v0  ;;  %v866_v35 = vpack.i.bf16 %v188_v0, %v189_v29 }
 0x53d   : > { %v591_v20 = vsel %vm194_vm0, %v1024_v19, 0.0 }
 0x53e   : > { %592 = vadd.xlane.f32.xlu0 %v591_v20  ;;  %867 = vrot.lane.b32.xlu2 %v866_v35, %s928_s25 }
 0x546   : > { %872 = vrot.lane.b32.xlu2 %v866_v35, %s933_s5 }
 0x598   : > { %v868_v52 = vpop.permute.xlu2 %867 }
 0x599   : > { %v870_v53 = vunpack.i.h.bf16 %v868_v52  ;;  %v869_v54 = vunpack.i.l.bf16 %v868_v52 }
 0x59b   : > { %677 = vmatpush.msrb.mxu1 %v869_v54 }
 0x59d   : > { %678 = vmatpush.msrb.mxu1 %v870_v53 }
 0x5a0   : > { %v873_v55 = vpop.permute.xlu2 %872 }
 0x5a1   : > { %v875_v56 = vunpack.i.h.bf16 %v873_v55  ;;  %v874_v57 = vunpack.i.l.bf16 %v873_v55 }
 0x5a3   : > { %711 = vmatpush.msrb.mxu0 %v874_v57 }
 0x5a5   : > { %712 = vmatpush.msrb.mxu0 %v875_v56 }
 0x5b1   : > { %v593_v21 = vpop.xlane.xlu0 %592 }
 0x5b2   : > { %v594_v22 = vmul.f32 %v593_v21, %v983_v8 }
 0x5b4   : > { %v595_v23 = vsub.f32 %v1024_v19, %v594_v22 }
 0x5b6   : > { %v596_v24 = vmul.f32 %v595_v23, %v595_v23 }
 0x5b8   : > { %v597_v25 = vsel %vm194_vm0, %v596_v24, 0.0 }
 0x5b9   : > { %598 = vadd.xlane.f32.xlu1 %v597_v25 }
 0x62c   : > { %v599_v31 = vpop.xlane.xlu1 %598 }
 0x62d   : > { %v600_v32 = vmul.f32 %v599_v31, %v983_v8 }
 0x62f   : > { %v601_v33 = vadd.f32 1e-05, %v600_v32 }
 0x631   : > { %880 = vrsqrt.f32 %v601_v33  ;;  %vm608_vm7 = vweird.f32 %v601_v33 }
 0x637   : > { %v881_v34 = vpop.eup %880 }
 0x638   : > { %v603_v36 = vmul.f32 %v881_v34, %v601_v33  ;;  %vm609_vm6 = vweird.f32 %v881_v34 }
 0x639   : > { %vm610_vm8 = vmor %vm608_vm7, %vm609_vm6 }
 0x63a   : > { %v604_v37 = vmul.f32 %v881_v34, %v603_v36 }
 0x63c   : > { %v605_v38 = vmul.f32 0.5, %v604_v37 }
 0x63e   : > { %v606_v39 = vsub.f32 1.5, %v605_v38 }
 0x640   : > { %v607_v40 = vmul.f32 %v881_v34, %v606_v39 }
 0x642   : > { %v611_v42 = vsel %vm610_vm8, %v881_v34, %v607_v40 }
 0x643   : > { %v612_v8 = vmul.f32 %v611_v42, %v595_v23 }
 0x645   : > { %v614_v44 = vmul.f32 %v613_v41, %v612_v8 }
 0x647   : > { %v616_v45 = vadd.f32 %v615_v43, %v614_v44 }
 0x649   : > { %812 = vmatmul.msk.f32.vlgmr.msrb.gmra.mxu3 %vm194_vm0, %v616_v45 }
 0x6cc   : > { %v638_v59 = vpop.f32.mrf.mxu3 }
 0x6cd   : > { %v639_v60 = vadd.f32 %v638_v59, %v617_v58 }
 0x6cf   : > { %v641_v61 = vmax.f32 %v639_v60, 0.0 }
 0x6d1   : > { %643 = vrot.lane.b32.xlu2 %v641_v61, %s931_s30  ;;  %814 = vmatmul.msk.f32.vlgmr.msrb.gmra.mxu0 %vm194_vm0, %v641_v61 }
 0x72b   : > { %v644_v62 = vpop.permute.xlu2 %643 }
 0x72c   : > { %813 = vmatmul.msk.f32.vlgmr.msrb.gmra.mxu1 %vm194_vm0, %v644_v62 }
 0x74e   : > { %v714_v1 = vpop.f32.mrf.mxu0 }
 0x7a9   : > { %v680_v2 = vpop.f32.mrf.mxu1 }
 0x7aa   : > { %v715_v3 = vadd.f32 %v714_v1, %v680_v2 }
 0x7ac   : > { %v718_v4 = vadd.f32 %v717_v63, %v715_v3 }
 0x7ae   : > { %v719_v5 = vadd.f32 %v718_v4, %v1024_v19 }
 0x7b0   : > { %720 = vst.msk [vmem:[%s182_s18] sm:$0xff] %vm194_vm0, %v719_v5 }
 0x7b1 PF: > { %s14_s12 = sadd.s32 1, %s922_s12  }
 0x7b2   : > { %p11_p7 = scmp.ge.s32.totalorder %s14_s12, 4  }
 0x7b4   :  { %13 = sbr.rel (!%p11_p7) target bundleno = 1 (0x1), region = 67 }
 0x7b9   :  { %740 = vsyncpa [#allocation3], 1 }
 0x7ba   :  { %742 = vsyncpa [#allocation3 + $0x1], 1 }

</bundles_post_ra>
